<compile_context>
chip_gen: v7x
topology: tpu7x:2x2x1
jax: 0.10.0
libtpu: 0.0.40
codegen_flags: <defaults>
</compile_context>

<pallas_src>
import functools

import jax
import jax.numpy as jnp
from jax import lax
from jax.experimental import pallas as pl
from jax.experimental.pallas import tpu as pltpu


def _round_up(x, m):
    return ((x + m - 1) // m) * m


def _fused_conv_kernel(a_ref, w_ref, b_ref, out_ref):
    """One M-tile: single MXU matmul + bias add into a lane-dense [real | imag] slab."""
    acc = jnp.dot(a_ref[...], w_ref[...], preferred_element_type=jnp.float32)
    out_ref[...] = (acc + b_ref[...]).astype(out_ref.dtype)


def _im2col(x, kh, kw):
    """x: (N, Cin, H, W) -> (N, Ho, Wo, Cin*kh*kw); column order ci*kh*kw + r*kw + c
    (matches w.reshape(Cout, -1)).  Assumes stride=1, padding=VALID (module defaults)."""
    n, cin, h, w = x.shape
    ho, wo = h - kh + 1, w - kw + 1
    taps = jnp.stack([x[:, :, r:r + ho, c:c + wo]
                      for r in range(kh) for c in range(kw)], axis=2)  # (N,Cin,KK,Ho,Wo)
    taps = jnp.transpose(taps, (0, 3, 4, 1, 2))                        # (N,Ho,Wo,Cin,KK)
    return taps.reshape(n, ho, wo, cin * kh * kw), (ho, wo)


@functools.partial(jax.jit,
                   static_argnames=("kernel_size", "tile_m", "compute_dtype"))
def normalized_complex_conv2d(x_complex, w_r, w_i, b_r, b_i, *,
                              kernel_size=3, tile_m=2048,
                              compute_dtype=jnp.bfloat16):
    """x_complex: (N, Cin, H, W) complex64.  w_*: (Cout, Cin, K, K).  b_*: (Cout,)."""
    k = kernel_size
    cout, cin = w_r.shape[0], w_r.shape[1]
    assert w_r.shape == (cout, cin, k, k) and w_i.shape == (cout, cin, k, k)

    # Cast activations to the streaming dtype BEFORE im2col so the materialized
    # matrix (the dominant HBM traffic) is already narrow.
    xr = jnp.real(x_complex).astype(compute_dtype)
    xi = jnp.imag(x_complex).astype(compute_dtype)

    ar4, (ho, wo) = _im2col(xr, k, k)                     # (N, Ho, Wo, Kdim)
    ai4, _ = _im2col(xi, k, k)
    n = xr.shape[0]
    kdim = cin * k * k
    m = n * ho * wo
    # Fused activation matrix: columns [real taps | imag taps], single materialization.
    a = jnp.concatenate([ar4, ai4], axis=-1).reshape(m, 2 * kdim)

    # ---- weight normalization: once, in f32 (tiny, outside the per-tile path) -----
    wr_n = w_r.astype(jnp.float32)
    wi_n = w_i.astype(jnp.float32)
    wr_n = wr_n - jnp.mean(wr_n)
    wr_n = wr_n / jnp.sum(wr_n ** 2)      # no eps guard: faithful to the PyTorch module
    wi_n = wi_n - jnp.mean(wi_n)
    wi_n = wi_n / jnp.sum(wi_n ** 2)
    wr_flat = wr_n.reshape(cout, kdim).T                  # (Kdim, Cout)
    wi_flat = wi_n.reshape(cout, kdim).T

    # ---- joint lane packing: [real out | imag out] in ONE 128-lane-aligned slab ---
    n_lanes = _round_up(2 * cout, 128)
    w_top = jnp.concatenate([wr_flat, wi_flat], axis=1)   # rows hit by a_r
    w_bot = jnp.concatenate([-wi_flat, wr_flat], axis=1)  # rows hit by a_i
    w_fused = jnp.concatenate([w_top, w_bot], axis=0)     # (2*Kdim, 2*Cout)
    w_packed = jnp.zeros((2 * kdim, n_lanes), jnp.float32).at[:, :2 * cout].set(w_fused)
    w_packed = w_packed.astype(compute_dtype)

    bias = jnp.zeros((1, n_lanes), jnp.float32)
    bias = bias.at[0, :cout].set((b_r - b_i).astype(jnp.float32))
    bias = bias.at[0, cout:2 * cout].set((b_r + b_i).astype(jnp.float32))

    # ---- tile M: big tiles, but keep grid_m >= 2 (v7x megacore, pipelining) -------
    cap = max(256, _round_up((m + 7) // 8, 8))     # aim for >= ~8 grid steps on big M
    tile = max(8, _round_up(min(tile_m, cap), 8))
    grid_m = pl.cdiv(m, tile)
    m_pad = grid_m * tile
    if m_pad != m:
        a = jnp.pad(a, ((0, m_pad - m), (0, 0)))   # zero rows -> bias-only, sliced off

    act_bytes = jnp.dtype(compute_dtype).itemsize
    # VMEM: double-buffered streamed tile + output tile + (double-buffered) resident
    # weights/bias.  TODO(synk): pl.Buffered(1) on the resident operands would save a
    # buffer each; negligible at this size.
    vmem_need = (2 * tile * 2 * kdim * act_bytes          # A tiles
                 + 2 * tile * n_lanes * 4                 # output tiles (f32)
                 + 2 * 2 * kdim * n_lanes * act_bytes     # packed weights
                 + 2 * n_lanes * 4)                       # bias
    vmem_limit = int(min(64 << 20, max(8 << 20, 2 * vmem_need)))

    cost = pl.CostEstimate(
        flops=int(2 * m_pad * 2 * kdim * n_lanes),
        transcendentals=0,
        bytes_accessed=int(m_pad * 2 * kdim * act_bytes   # streamed A
                           + 2 * kdim * n_lanes * act_bytes
                           + n_lanes * 4
                           + m_pad * n_lanes * 4))        # f32 output writes

    out_flat = pl.pallas_call(
        _fused_conv_kernel,
        out_shape=jax.ShapeDtypeStruct((m_pad, n_lanes), jnp.float32),
        grid=(grid_m,),
        in_specs=[
            pl.BlockSpec((tile, 2 * kdim), lambda i: (i, 0)),     # streamed A tile
            pl.BlockSpec((2 * kdim, n_lanes), lambda i: (0, 0)),  # VMEM-resident weights
            pl.BlockSpec((1, n_lanes), lambda i: (0, 0)),         # VMEM-resident bias
        ],
        out_specs=pl.BlockSpec((tile, n_lanes), lambda i: (i, 0)),
        compiler_params=pltpu.CompilerParams(
            dimension_semantics=("parallel",),
            vmem_limit_bytes=vmem_limit),
        cost_estimate=cost,
    )(a, w_packed, bias)

    out_r = out_flat[:m, :cout].reshape(n, ho, wo, cout)
    out_i = out_flat[:m, cout:2 * cout].reshape(n, ho, wo, cout)
    out_r = jnp.transpose(out_r, (0, 3, 1, 2))
    out_i = jnp.transpose(out_i, (0, 3, 1, 2))
    return lax.complex(out_r, out_i)


def _reference(x_complex, w_r, w_i, b_r, b_i):
    """Pure-JAX reference matching the PyTorch forward exactly."""
    wr = w_r - jnp.mean(w_r)
    wr = wr / jnp.sum(wr ** 2)
    wi = w_i - jnp.mean(w_i)
    wi = wi / jnp.sum(wi ** 2)

    def conv(x, w, b):
        y = lax.conv_general_dilated(x, w, window_strides=(1, 1), padding="VALID",
                                     dimension_numbers=("NCHW", "OIHW", "NCHW"))
        return y + b.reshape(1, -1, 1, 1)

    xr = jnp.real(x_complex)
    xi = jnp.imag(x_complex)
    real = conv(xr, wr, b_r) - conv(xi, wi, b_i)
    imag = conv(xi, wr, b_r) + conv(xr, wi, b_i)
    return lax.complex(real, imag)


if __name__ == "__main__":
    key = jax.random.PRNGKey(0)
    k_xr, k_xi, k_wr, k_wi, k_br, k_bi = jax.random.split(key, 6)

    N, Cin, H, W = 2, 4, 16, 16
    Cout, K = 8, 3

    x = (jax.random.normal(k_xr, (N, Cin, H, W), jnp.float32)
         + 1j * jax.random.normal(k_xi, (N, Cin, H, W), jnp.float32)).astype(jnp.complex64)

    # Deterministic parameter init (PyTorch-style uniform bound = 1/sqrt(fan_in)).
    fan_in = Cin * K * K
    bound = 1.0 / (fan_in ** 0.5)
    w_r = jax.random.uniform(k_wr, (Cout, Cin, K, K), jnp.float32, -bound, bound)
    w_i = jax.random.uniform(k_wi, (Cout, Cin, K, K), jnp.float32, -bound, bound)
    b_r = jax.random.uniform(k_br, (Cout,), jnp.float32, -bound, bound)
    b_i = jax.random.uniform(k_bi, (Cout,), jnp.float32, -bound, bound)

    ref = jax.block_until_ready(_reference(x, w_r, w_i, b_r, b_i))

    def rel_err(out, want):
        return float(jnp.max(jnp.abs(out - want)) / (jnp.max(jnp.abs(want)) + 1e-12))

    # f32 path (tight numerics).  M = 2*14*14 = 392 -> tile 256, grid 2: exercises the
    # M-remainder padding and gives >= 2 grid steps for the "parallel" axis.
    out_f32 = jax.block_until_ready(
        normalized_complex_conv2d(x, w_r, w_i, b_r, b_i, kernel_size=K,
                                  compute_dtype=jnp.float32))
    assert out_f32.shape == (N, Cout, H - K + 1, W - K + 1)
    assert rel_err(out_f32, ref) < 1e-4, rel_err(out_f32, ref)

    # Default bf16 streaming path (halved HBM traffic on the dominant operand);
    # looser tolerance for the bf16 cast of the normalized weights / activations.
    out_bf16 = jax.block_until_ready(
        normalized_complex_conv2d(x, w_r, w_i, b_r, b_i, kernel_size=K))
    assert out_bf16.shape == (N, Cout, H - K + 1, W - K + 1)
    assert rel_err(out_bf16, ref) < 5e-2, rel_err(out_bf16, ref)

    print("KERNEL_OK")
</pallas_src>

<mosaic_0001>
module attributes {stable_mosaic.version = 11 : i64} {
  func.func @_fused_conv_kernel(%arg0: i32, %arg1: memref<256x72xf32, #tpu.memory_space<vmem>>, %arg2: memref<72x128xf32, #tpu.memory_space<vmem>>, %arg3: memref<1x128xf32, #tpu.memory_space<vmem>>, %arg4: memref<256x128xf32, #tpu.memory_space<vmem>>) attributes {dimension_semantics = [#tpu.dimension_semantics<parallel>], iteration_bounds = array<i64: 2>, scalar_prefetch = 0 : i64, scratch_operands = 0 : i64, tpu.core_type = #tpu.core_type<tc>, window_params = [{transform_indices = @transform_0, window_bounds = array<i64: 256, 72>}, {pipeline_mode = #tpu.pipeline_mode<synchronous>, transform_indices = @transform_1, window_bounds = array<i64: 72, 128>}, {pipeline_mode = #tpu.pipeline_mode<synchronous>, transform_indices = @transform_2, window_bounds = array<i64: 1, 128>}, {transform_indices = @transform_3, window_bounds = array<i64: 256, 128>}]} {
    %c0 = arith.constant 0 : index
    %c0_0 = arith.constant 0 : index
    %0 = vector.load %arg1[%c0, %c0_0] : memref<256x72xf32, #tpu.memory_space<vmem>>, vector<256x72xf32>
    %c0_1 = arith.constant 0 : index
    %c0_2 = arith.constant 0 : index
    %1 = vector.load %arg2[%c0_1, %c0_2] : memref<72x128xf32, #tpu.memory_space<vmem>>, vector<72x128xf32>
    %cst = arith.constant dense<0.000000e+00> : vector<256x128xf32>
    %2 = tpu.matmul %0, %1, %cst {dimension_numbers = #tpu.dot_dimension_numbers<[1], [0], [0], [1], [0, 0, 1, 1], [], []>} : vector<256x72xf32>, vector<72x128xf32>, vector<256x128xf32> -> vector<256x128xf32>
    %c0_3 = arith.constant 0 : index
    %c0_4 = arith.constant 0 : index
    %3 = vector.load %arg3[%c0_3, %c0_4] : memref<1x128xf32, #tpu.memory_space<vmem>>, vector<1x128xf32>
    %4 = vector.broadcast %3 : vector<1x128xf32> to vector<256x128xf32>
    %5 = arith.addf %2, %4 : vector<256x128xf32>
    %c0_5 = arith.constant 0 : index
    %c0_6 = arith.constant 0 : index
    %6 = vector.load %arg4[%c0_5, %c0_6] : memref<256x128xf32, #tpu.memory_space<vmem>>, vector<256x128xf32>
    tpu.vector_store %arg4[%c0_5, %c0_6], %5 {strides = array<i32>} : memref<256x128xf32, #tpu.memory_space<vmem>>, vector<256x128xf32>,
    return
  }
  func.func @transform_0(%arg0: i32) -> (i32, i32) {
    %c0_i32 = arith.constant 0 : i32
    %c0_i32_0 = arith.constant 0 : i32
    return %arg0, %c0_i32 : i32, i32
  }
  func.func @transform_1(%arg0: i32) -> (i32, i32) {
    %c0_i32 = arith.constant 0 : i32
    %c0_i32_0 = arith.constant 0 : i32
    %c0_i32_1 = arith.constant 0 : i32
    return %c0_i32, %c0_i32_0 : i32, i32
  }
  func.func @transform_2(%arg0: i32) -> (i32, i32) {
    %c0_i32 = arith.constant 0 : i32
    %c0_i32_0 = arith.constant 0 : i32
    %c0_i32_1 = arith.constant 0 : i32
    return %c0_i32, %c0_i32_0 : i32, i32
  }
  func.func @transform_3(%arg0: i32) -> (i32, i32) {
    %c0_i32 = arith.constant 0 : i32
    %c0_i32_0 = arith.constant 0 : i32
    return %arg0, %c0_i32 : i32, i32
  }
}

</mosaic_0001>

<bundles_post_ra>
// kernel: custom-call
= control target key start
LH: loop header
LB: loop body
LE: loop exit
PB: predicated region body
PF: predicated region fallthrough
CT: control target
= control target key end

     0   :  { %2 = vsyncpa [#allocation0], 0  ;;  %s61_s0 = inlined_call_operand.hbm [shape: c64[2,4,16,16], index: 0, kind: input, shape index: {}]   ;;  %s62_s1 = inlined_call_operand.vmem [shape: f32[2,4,16,16], index: 1, kind: output, shape index: {}]  }
   0x1   :  { %s3_s8 = sshll.u32 %s62_s1, 4  ;;  %s9_s11 = scalar_lea.hbm %s61_s0, 2048  ;;  %s4_s8 = int_to_ptr.vmem [resolvable:$true] %s3_s8 }
   0x2   :  { %p10_p0 = scmp.ne.s32.totalorder %s61_s0, %s9_s11  ;;  %s11_s16 = scalar_lea.hbm %s61_s0, 4096 }
   0x3   :  { %p12_p1 = scmp.lt.u32.totalorder %s11_s16, %s9_s11  ;;  %p13_p2 = scmp.lt.u32.totalorder %s9_s11, %s61_s0 }
   0x5   :  { %p14_p3 = por %p13_p2, %p12_p1 }
   0x7   :  { %p15_p4 = pnand %p14_p3, %p10_p0 }
   0x9   :  { %18 = shalt.err (!%p15_p4)  }
   0xa   :  { %s19_s1 = scalar_lea.vmem %s4_s8, 2048  ;;  %p24_p6 = scmp.lt.s32.totalorder %s4_s8, %s4_s8 }
   0xb   :  { %p20_p5 = scmp.ne.s32.totalorder %s4_s8, %s19_s1  ;;  %p25_p7 = scmp.lt.s32.totalorder %s19_s1, %s19_s1 }
   0xd   :  { %p26_p8 = por %p25_p7, %p24_p6 }
   0xf   :  { %p27_p9 = pnand %p26_p8, %p20_p5 }
  0x11   :  { %30 = shalt.err (!%p27_p9)  }
  0x12   :  { %6 = dma.hbm_to_vmem [thread:$0]  %s61_s0, 2048, %s4_s8, [#allocation0] }
  0x13   :  { %31 = dma.done.wait [#allocation0], 2048  }
  0x14   :  { %32 = vsyncadd [#allocation0], 4294965248 }
  0x15   :  { %8 = vsyncpa [#allocation0], 1 }

// kernel: custom-call.1
= control target key start
LH: loop header
LB: loop body
LE: loop exit
PB: predicated region body
PF: predicated region fallthrough
CT: control target
= control target key end

     0   :  { %s59_s0 = inlined_call_operand.hbm [shape: c64[2,4,16,16], index: 0, kind: input, shape index: {}]   ;;  %s60_s1 = inlined_call_operand.vmem [shape: f32[2,4,16,16], index: 1, kind: output, shape index: {}]  }
   0x1   :  { %s2_s8 = scalar_lea.hbm %s59_s0, 2048 }
   0x2   :  { %3 = vsyncpa [#allocation0], 0  ;;  %s4_s11 = sshll.u32 %s60_s1, 4  ;;  %s34_s14 = scalar_lea.hbm %s59_s0, 4096  ;;  %s5_s11 = int_to_ptr.vmem [resolvable:$true] %s4_s11 }
   0x3   :  { %p11_p0 = scmp.ne.s32.totalorder %s2_s8, %s34_s14  ;;  %p13_p1 = scmp.lt.u32.totalorder %s2_s8, %s59_s0 }
   0x4   :  { %p14_p2 = scmp.lt.u32.totalorder %s34_s14, %s34_s14  ;;  %p16_p4 = scmp.lt.u32.totalorder %s34_s14, %s2_s8 }
   0x6   :  { %p15_p3 = por %p14_p2, %p13_p1 }
   0x8   :  { %p17_p5 = por %p16_p4, %p15_p3 }
   0xa   :  { %p18_p6 = pnand %p17_p5, %p11_p0 }
   0xc   :  { %21 = shalt.err (!%p18_p6)  }
   0xd   :  { %s22_s17 = scalar_lea.vmem %s5_s11, 2048  ;;  %p27_p8 = scmp.lt.s32.totalorder %s5_s11, %s5_s11 }
   0xe   :  { %p23_p7 = scmp.ne.s32.totalorder %s5_s11, %s22_s17  ;;  %p28_p9 = scmp.lt.s32.totalorder %s22_s17, %s22_s17 }
  0x10   :  { %p29_p10 = por %p28_p9, %p27_p8 }
  0x12   :  { %p30_p11 = pnand %p29_p10, %p23_p7 }
  0x14   :  { %33 = shalt.err (!%p30_p11)  }
  0x15   :  { %7 = dma.hbm_to_vmem [thread:$0]  %s2_s8, 2048, %s5_s11, [#allocation0] }
  0x16   :  { %35 = dma.done.wait [#allocation0], 2048  }
  0x17   :  { %36 = vsyncadd [#allocation0], 4294965248 }
  0x18   :  { %9 = vsyncpa [#allocation0], 1 }

// kernel: custom-call.2
= control target key start
LH: loop header
LB: loop body
LE: loop exit
PB: predicated region body
PF: predicated region fallthrough
CT: control target
= control target key end

     0   :  { %s812_s0 = inlined_call_operand.vmem [shape: f32[2,8,14,14], index: 0, kind: input, shape index: {}]   ;;  %s813_s2 = inlined_call_operand.vmem [shape: c64[2,8,14,14], index: 2, kind: output, shape index: {}]   ;;  %s814_s1 = inlined_call_operand.vmem [shape: f32[2,8,14,14], index: 1, kind: input, shape index: {}]  }
   0x1   :  { %v5_v0 = vld [vmem:[%s812_s0] sm:$0xff]  ;;  %v288_v1 = vld [vmem:[%s812_s0 + $0x8] sm:$0xff]  ;;  %v290_v2 = vld [vmem:[%s812_s0 + $0x10] sm:$0xff] }
   0x2   :  { %6 = vst [vmem:[%s813_s2] sm:$0xff] %v5_v0  ;;  %289 = vst [vmem:[%s813_s2 + $0x8] sm:$0xff] %v288_v1  ;;  %v292_v3 = vld [vmem:[%s812_s0 + $0x18] sm:$0xff]  ;;  %v294_v4 = vld [vmem:[%s812_s0 + $0x20] sm:$0xff] }
   0x3   :  { %291 = vst [vmem:[%s813_s2 + $0x10] sm:$0xff] %v290_v2  ;;  %v296_v5 = vld [vmem:[%s812_s0 + $0x28] sm:$0xff]  ;;  %293 = vst [vmem:[%s813_s2 + $0x18] sm:$0xff] %v292_v3  ;;  %v298_v6 = vld [vmem:[%s812_s0 + $0x30] sm:$0xff] }
   0x4   :  { %295 = vst [vmem:[%s813_s2 + $0x20] sm:$0xff] %v294_v4  ;;  %297 = vst [vmem:[%s813_s2 + $0x28] sm:$0xff] %v296_v5  ;;  %v300_v7 = vld [vmem:[%s812_s0 + $0x38] sm:$0xff]  ;;  %v302_v8 = vld [vmem:[%s812_s0 + $0x40] sm:$0xff] }
   0x5   :  { %299 = vst [vmem:[%s813_s2 + $0x30] sm:$0xff] %v298_v6  ;;  %301 = vst [vmem:[%s813_s2 + $0x38] sm:$0xff] %v300_v7  ;;  %v304_v9 = vld [vmem:[%s812_s0 + $0x48] sm:$0xff]  ;;  %v306_v10 = vld [vmem:[%s812_s0 + $0x50] sm:$0xff] }
   0x6   :  { %303 = vst [vmem:[%s813_s2 + $0x40] sm:$0xff] %v302_v8  ;;  %v308_v11 = vld [vmem:[%s812_s0 + $0x58] sm:$0xff]  ;;  %305 = vst [vmem:[%s813_s2 + $0x48] sm:$0xff] %v304_v9  ;;  %v310_v12 = vld [vmem:[%s812_s0 + $0x60] sm:$0xff] }
   0x7   :  { %307 = vst [vmem:[%s813_s2 + $0x50] sm:$0xff] %v306_v10  ;;  %309 = vst [vmem:[%s813_s2 + $0x58] sm:$0xff] %v308_v11  ;;  %v312_v13 = vld [vmem:[%s812_s0 + $0x68] sm:$0xff]  ;;  %v314_v14 = vld [vmem:[%s812_s0 + $0x70] sm:$0xff] }
   0x8   :  { %311 = vst [vmem:[%s813_s2 + $0x60] sm:$0xff] %v310_v12  ;;  %313 = vst [vmem:[%s813_s2 + $0x68] sm:$0xff] %v312_v13  ;;  %v316_v15 = vld [vmem:[%s812_s0 + $0x78] sm:$0xff]  ;;  %v318_v16 = vld [vmem:[%s812_s0 + $0x80] sm:$0xff] }
   0x9   :  { %315 = vst [vmem:[%s813_s2 + $0x70] sm:$0xff] %v314_v14  ;;  %v320_v17 = vld [vmem:[%s812_s0 + $0x88] sm:$0xff]  ;;  %317 = vst [vmem:[%s813_s2 + $0x78] sm:$0xff] %v316_v15  ;;  %v322_v18 = vld [vmem:[%s812_s0 + $0x90] sm:$0xff] }
   0xa   :  { %319 = vst [vmem:[%s813_s2 + $0x80] sm:$0xff] %v318_v16  ;;  %321 = vst [vmem:[%s813_s2 + $0x88] sm:$0xff] %v320_v17  ;;  %v324_v19 = vld [vmem:[%s812_s0 + $0x98] sm:$0xff]  ;;  %v326_v20 = vld [vmem:[%s812_s0 + $0xa0] sm:$0xff] }
   0xb   :  { %323 = vst [vmem:[%s813_s2 + $0x90] sm:$0xff] %v322_v18  ;;  %325 = vst [vmem:[%s813_s2 + $0x98] sm:$0xff] %v324_v19  ;;  %v328_v21 = vld [vmem:[%s812_s0 + $0xa8] sm:$0xff]  ;;  %v330_v22 = vld [vmem:[%s812_s0 + $0xb0] sm:$0xff] }
   0xc   :  { %327 = vst [vmem:[%s813_s2 + $0xa0] sm:$0xff] %v326_v20  ;;  %v332_v23 = vld [vmem:[%s812_s0 + $0xb8] sm:$0xff]  ;;  %329 = vst [vmem:[%s813_s2 + $0xa8] sm:$0xff] %v328_v21  ;;  %v334_v24 = vld [vmem:[%s812_s0 + $0xc0] sm:$0xff] }
   0xd   :  { %331 = vst [vmem:[%s813_s2 + $0xb0] sm:$0xff] %v330_v22  ;;  %333 = vst [vmem:[%s813_s2 + $0xb8] sm:$0xff] %v332_v23  ;;  %v336_v25 = vld [vmem:[%s812_s0 + $0xc8] sm:$0xff]  ;;  %v338_v26 = vld [vmem:[%s812_s0 + $0xd0] sm:$0xff] }
   0xe   :  { %335 = vst [vmem:[%s813_s2 + $0xc0] sm:$0xff] %v334_v24  ;;  %337 = vst [vmem:[%s813_s2 + $0xc8] sm:$0xff] %v336_v25  ;;  %v340_v27 = vld [vmem:[%s812_s0 + $0xd8] sm:$0xff]  ;;  %v342_v28 = vld [vmem:[%s812_s0 + $0xe0] sm:$0xff] }
   0xf   :  { %339 = vst [vmem:[%s813_s2 + $0xd0] sm:$0xff] %v338_v26  ;;  %v344_v29 = vld [vmem:[%s812_s0 + $0xe8] sm:$0xff]  ;;  %341 = vst [vmem:[%s813_s2 + $0xd8] sm:$0xff] %v340_v27  ;;  %v346_v30 = vld [vmem:[%s812_s0 + $0xf0] sm:$0xff] }
  0x10   :  { %343 = vst [vmem:[%s813_s2 + $0xe0] sm:$0xff] %v342_v28  ;;  %345 = vst [vmem:[%s813_s2 + $0xe8] sm:$0xff] %v344_v29  ;;  %v348_v31 = vld [vmem:[%s812_s0 + $0xf8] sm:$0xff]  ;;  %v131_v32 = vld [vmem:[%s814_s1] sm:$0xff] }
  0x11   :  { %347 = vst [vmem:[%s813_s2 + $0xf0] sm:$0xff] %v346_v30  ;;  %349 = vst [vmem:[%s813_s2 + $0xf8] sm:$0xff] %v348_v31  ;;  %v351_v33 = vld [vmem:[%s814_s1 + $0x8] sm:$0xff]  ;;  %v353_v34 = vld [vmem:[%s814_s1 + $0x10] sm:$0xff] }
  0x12   :  { %350 = vst [vmem:[%s813_s2 + $0x100] sm:$0xff] %v131_v32  ;;  %v355_v35 = vld [vmem:[%s814_s1 + $0x18] sm:$0xff]  ;;  %352 = vst [vmem:[%s813_s2 + $0x108] sm:$0xff] %v351_v33  ;;  %v357_v36 = vld [vmem:[%s814_s1 + $0x20] sm:$0xff] }
  0x13   :  { %354 = vst [vmem:[%s813_s2 + $0x110] sm:$0xff] %v353_v34  ;;  %356 = vst [vmem:[%s813_s2 + $0x118] sm:$0xff] %v355_v35  ;;  %v359_v37 = vld [vmem:[%s814_s1 + $0x28] sm:$0xff]  ;;  %v361_v38 = vld [vmem:[%s814_s1 + $0x30] sm:$0xff] }
  0x14   :  { %358 = vst [vmem:[%s813_s2 + $0x120] sm:$0xff] %v357_v36  ;;  %360 = vst [vmem:[%s813_s2 + $0x128] sm:$0xff] %v359_v37  ;;  %v363_v39 = vld [vmem:[%s814_s1 + $0x38] sm:$0xff]  ;;  %v365_v40 = vld [vmem:[%s814_s1 + $0x40] sm:$0xff] }
  0x15   :  { %362 = vst [vmem:[%s813_s2 + $0x130] sm:$0xff] %v361_v38  ;;  %v367_v41 = vld [vmem:[%s814_s1 + $0x48] sm:$0xff]  ;;  %364 = vst [vmem:[%s813_s2 + $0x138] sm:$0xff] %v363_v39  ;;  %v369_v42 = vld [vmem:[%s814_s1 + $0x50] sm:$0xff] }
  0x16   :  { %366 = vst [vmem:[%s813_s2 + $0x140] sm:$0xff] %v365_v40  ;;  %368 = vst [vmem:[%s813_s2 + $0x148] sm:$0xff] %v367_v41  ;;  %v371_v43 = vld [vmem:[%s814_s1 + $0x58] sm:$0xff]  ;;  %v373_v44 = vld [vmem:[%s814_s1 + $0x60] sm:$0xff] }
  0x17   :  { %370 = vst [vmem:[%s813_s2 + $0x150] sm:$0xff] %v369_v42  ;;  %372 = vst [vmem:[%s813_s2 + $0x158] sm:$0xff] %v371_v43  ;;  %v375_v45 = vld [vmem:[%s814_s1 + $0x68] sm:$0xff]  ;;  %v377_v46 = vld [vmem:[%s814_s1 + $0x70] sm:$0xff] }
  0x18   :  { %374 = vst [vmem:[%s813_s2 + $0x160] sm:$0xff] %v373_v44  ;;  %v379_v47 = vld [vmem:[%s814_s1 + $0x78] sm:$0xff]  ;;  %376 = vst [vmem:[%s813_s2 + $0x168] sm:$0xff] %v375_v45  ;;  %v381_v48 = vld [vmem:[%s814_s1 + $0x80] sm:$0xff] }
  0x19   :  { %378 = vst [vmem:[%s813_s2 + $0x170] sm:$0xff] %v377_v46  ;;  %380 = vst [vmem:[%s813_s2 + $0x178] sm:$0xff] %v379_v47  ;;  %v383_v49 = vld [vmem:[%s814_s1 + $0x88] sm:$0xff]  ;;  %v385_v50 = vld [vmem:[%s814_s1 + $0x90] sm:$0xff] }
  0x1a   :  { %382 = vst [vmem:[%s813_s2 + $0x180] sm:$0xff] %v381_v48  ;;  %384 = vst [vmem:[%s813_s2 + $0x188] sm:$0xff] %v383_v49  ;;  %v387_v51 = vld [vmem:[%s814_s1 + $0x98] sm:$0xff]  ;;  %v389_v52 = vld [vmem:[%s814_s1 + $0xa0] sm:$0xff] }
  0x1b   :  { %386 = vst [vmem:[%s813_s2 + $0x190] sm:$0xff] %v385_v50  ;;  %v391_v53 = vld [vmem:[%s814_s1 + $0xa8] sm:$0xff]  ;;  %388 = vst [vmem:[%s813_s2 + $0x198] sm:$0xff] %v387_v51  ;;  %v393_v54 = vld [vmem:[%s814_s1 + $0xb0] sm:$0xff] }
  0x1c   :  { %390 = vst [vmem:[%s813_s2 + $0x1a0] sm:$0xff] %v389_v52  ;;  %392 = vst [vmem:[%s813_s2 + $0x1a8] sm:$0xff] %v391_v53  ;;  %v395_v55 = vld [vmem:[%s814_s1 + $0xb8] sm:$0xff]  ;;  %v397_v56 = vld [vmem:[%s814_s1 + $0xc0] sm:$0xff] }
  0x1d   :  { %394 = vst [vmem:[%s813_s2 + $0x1b0] sm:$0xff] %v393_v54  ;;  %396 = vst [vmem:[%s813_s2 + $0x1b8] sm:$0xff] %v395_v55  ;;  %v399_v57 = vld [vmem:[%s814_s1 + $0xc8] sm:$0xff]  ;;  %v401_v58 = vld [vmem:[%s814_s1 + $0xd0] sm:$0xff] }
  0x1e   :  { %398 = vst [vmem:[%s813_s2 + $0x1c0] sm:$0xff] %v397_v56  ;;  %v403_v59 = vld [vmem:[%s814_s1 + $0xd8] sm:$0xff]  ;;  %400 = vst [vmem:[%s813_s2 + $0x1c8] sm:$0xff] %v399_v57  ;;  %v405_v60 = vld [vmem:[%s814_s1 + $0xe0] sm:$0xff] }
  0x1f   :  { %402 = vst [vmem:[%s813_s2 + $0x1d0] sm:$0xff] %v401_v58  ;;  %404 = vst [vmem:[%s813_s2 + $0x1d8] sm:$0xff] %v403_v59  ;;  %v407_v61 = vld [vmem:[%s814_s1 + $0xe8] sm:$0xff]  ;;  %v409_v62 = vld [vmem:[%s814_s1 + $0xf0] sm:$0xff] }
  0x20   :  { %406 = vst [vmem:[%s813_s2 + $0x1e0] sm:$0xff] %v405_v60  ;;  %408 = vst [vmem:[%s813_s2 + $0x1e8] sm:$0xff] %v407_v61  ;;  %v411_v63 = vld [vmem:[%s814_s1 + $0xf8] sm:$0xff] }
  0x21   :  { %410 = vst [vmem:[%s813_s2 + $0x1f0] sm:$0xff] %v409_v62  ;;  %412 = vst [vmem:[%s813_s2 + $0x1f8] sm:$0xff] %v411_v63 }

// kernel: normalized_complex_conv2d.1
= control target key start
LH: loop header
LB: loop body
LE: loop exit
PB: predicated region body
PF: predicated region fallthrough
CT: control target
= control target key end

     0   :  { %s845_s12 = smov 0   ;;  %s1033_s0 = inlined_call_operand.vmem [shape: f32[512,72], index: 0, kind: input, shape index: {}]   ;;  %s1034_s1 = inlined_call_operand.vmem [shape: f32[72,128], index: 1, kind: input, shape index: {}]   ;;  %s1035_s2 = inlined_call_operand.vmem [shape: f32[1,128], index: 2, kind: input, shape index: {}]   ;;  %s1036_s3 = inlined_call_operand.vmem [shape: f32[512,128], index: 3, kind: output, shape index: {}]  }
   0x1 LB: > { %s632_s13 = sadd.s32 4294967295, %s823_s12   ;;  %p636_p0 = scmp.ge.s32.totalorder %s823_s12, 1  ;;  %s823_s12 = sphi %s845_s12, %s13_s12  }
   0x2   : > { %p138_p1 = scmp.lt.s32.totalorder %s823_s12, 3 }
   0x4   : > { %p139_p2 = pnand %p636_p0, %p138_p1 }
   0x5   : > { %v206_v0 = vld [vmem:[%s1034_s1] sm:$0xff] (!%p139_p2)  ;;  %v207_v1 = vld [vmem:[%s1034_s1 + $0x8] sm:$0xff] (!%p139_p2)  ;;  %v208_v2 = vld [vmem:[%s1034_s1 + $0x10] sm:$0xff] (!%p139_p2)  ;;  %s637_s20 = sshll.u32 (!%p139_p2), %s632_s13, 5  ;;  %vm222_vm0 = vcmask (!%p139_p2), 588800  }
   0x6   : > { %142 = sbr.rel (%p139_p2) target bundleno = 271 (0x10f), region = 32  ;;  %v783_v3 = vpack.c.bf16 (!%p139_p2), %v207_v1, %v206_v0  ;;  %v209_v4 = vld [vmem:[%s1034_s1 + $0x18] sm:$0xff] (!%p139_p2)  ;;  %p163_p3 = scmp.lt.s32.totalorder (!%p139_p2), %s637_s20, 63  ;;  %v210_v6 = vld [vmem:[%s1034_s1 + $0x20] sm:$0xff] (!%p139_p2)  ;;  %v211_v7 = vld [vmem:[%s1034_s1 + $0x28] sm:$0xff] (!%p139_p2) }
   0x7   : > { %v787_v5 = vpack.c.bf16 (!%p139_p2), %v209_v4, %v208_v2  ;;  %v791_v8 = vpack.c.bf16 (!%p139_p2), %v211_v7, %v210_v6  ;;  %v212_v9 = vld [vmem:[%s1034_s1 + $0x30] sm:$0xff] (!%p139_p2)  ;;  %v213_v10 = vld [vmem:[%s1034_s1 + $0x38] sm:$0xff] (!%p139_p2)  ;;  %v214_v14 = vld [vmem:[%s1034_s1 + $0x40] sm:$0xff] (!%p139_p2) }
   0x8   : > { %784 = vmatprep.subr.bf16.mxu0 (!%p139_p2), %v783_v3  ;;  %799 = vmatprep.subr.bf16.mxu1 (!%p139_p2), %v783_v3  ;;  %v795_v13 = vpack.c.bf16 (!%p139_p2), %v213_v10, %v212_v9  ;;  %v957_v45 = vld [vmem:[%s1035_s2] ss:$0 sm:$0xff] (!%p139_p2) }
   0x9   : > { %786 = vmatpush3.bf16.msra.mxu0 (!%p139_p2), %v783_v3  ;;  %804 = vmatpush3.bf16.msra.mxu1 (!%p139_p2), %v783_v3 }
   0xa   : > { %788 = vmatprep.subr.bf16.mxu0 (!%p139_p2), %v787_v5  ;;  %800 = vmatprep.subr.bf16.mxu1 (!%p139_p2), %v787_v5 }
   0xd   : > { %s1038_s20 = smov (!%p163_p3, %s637_s20), 63  ;;  %790 = vmatpush3.bf16.msra.mxu0 %v787_v5  ;;  %805 = vmatpush3.bf16.msra.mxu1 %v787_v5 }
   0xe   : > { %s638_s27 = sshll.u32 %s1038_s20, 3  ;;  %792 = vmatprep.subr.bf16.mxu0 %v791_v8  ;;  %801 = vmatprep.subr.bf16.mxu1 %v791_v8 }
   0xf   : > { %s885_s7 = scalar_lea.vmem %s1033_s0, %s638_s27  ;;  %s964_s15 = scalar_lea.vmem %s1036_s3, %s638_s27 }
  0x10   : > { %v174_v11 = vld [vmem:[%s885_s7] sm:$0xff]  ;;  %v175_v15 = vld [vmem:[%s885_s7 + $0x8] sm:$0xff]  ;;  %v176_v17 = vld [vmem:[%s885_s7 + $0x10] sm:$0xff] }
  0x11   : > { %v190_v12 = vld [vmem:[%s885_s7 + $0x80] sm:$0xff]  ;;  %735 = vmatprep.mubr.msk.f32.mxu0 %vm222_vm0, %v174_v11  ;;  %794 = vmatpush3.bf16.msra.mxu0 %v791_v8  ;;  %v191_v16 = vld [vmem:[%s885_s7 + $0x88] sm:$0xff]  ;;  %v192_v18 = vld [vmem:[%s885_s7 + $0x90] sm:$0xff] }
  0x12   : > { %759 = vmatprep.mubr.msk.f32.mxu1 %vm222_vm0, %v190_v12  ;;  %806 = vmatpush3.bf16.msra.mxu1 %v791_v8  ;;  %v177_v19 = vld [vmem:[%s885_s7 + $0x18] sm:$0xff]  ;;  %v178_v21 = vld [vmem:[%s885_s7 + $0x20] sm:$0xff]  ;;  %v179_v23 = vld [vmem:[%s885_s7 + $0x28] sm:$0xff] }
  0x13   : > { %796 = vmatprep.subr.bf16.mxu0 %v795_v13  ;;  %802 = vmatprep.subr.bf16.mxu1 %v795_v13  ;;  %v193_v20 = vld [vmem:[%s885_s7 + $0x98] sm:$0xff]  ;;  %v194_v22 = vld [vmem:[%s885_s7 + $0xa0] sm:$0xff]  ;;  %v195_v24 = vld [vmem:[%s885_s7 + $0xa8] sm:$0xff] }
  0x14   : > { %v180_v25 = vld [vmem:[%s885_s7 + $0x30] sm:$0xff]  ;;  %v181_v27 = vld [vmem:[%s885_s7 + $0x38] sm:$0xff]  ;;  %v182_v29 = vld [vmem:[%s885_s7 + $0x40] sm:$0xff] }
  0x15   : > { %798 = vmatpush3.bf16.msra.mxu0 %v795_v13  ;;  %v196_v26 = vld [vmem:[%s885_s7 + $0xb0] sm:$0xff]  ;;  %v197_v28 = vld [vmem:[%s885_s7 + $0xb8] sm:$0xff]  ;;  %v198_v30 = vld [vmem:[%s885_s7 + $0xc0] sm:$0xff] }
  0x16   : > { %807 = vmatpush3.bf16.msra.mxu1 %v795_v13  ;;  %733 = vmatprep.subr.mxu0 %v214_v14  ;;  %v183_v31 = vld [vmem:[%s885_s7 + $0x48] sm:$0xff]  ;;  %v184_v33 = vld [vmem:[%s885_s7 + $0x50] sm:$0xff]  ;;  %v185_v35 = vld [vmem:[%s885_s7 + $0x58] sm:$0xff] }
  0x17   : > { %803 = vmatprep.subr.mxu1 %v214_v14  ;;  %v199_v32 = vld [vmem:[%s885_s7 + $0xc8] sm:$0xff]  ;;  %v200_v34 = vld [vmem:[%s885_s7 + $0xd0] sm:$0xff]  ;;  %v201_v36 = vld [vmem:[%s885_s7 + $0xd8] sm:$0xff] }
  0x18   : > { %v186_v37 = vld [vmem:[%s885_s7 + $0x60] sm:$0xff]  ;;  %v187_v39 = vld [vmem:[%s885_s7 + $0x68] sm:$0xff]  ;;  %v188_v41 = vld [vmem:[%s885_s7 + $0x70] sm:$0xff] }
  0x19   : > { %734 = vmatpush3.msra.mxu0 %v214_v14  ;;  %v202_v38 = vld [vmem:[%s885_s7 + $0xe0] sm:$0xff]  ;;  %v203_v40 = vld [vmem:[%s885_s7 + $0xe8] sm:$0xff]  ;;  %v204_v42 = vld [vmem:[%s885_s7 + $0xf0] sm:$0xff] }
  0x1a   : > { %808 = vmatpush3.msra.mxu1 %v214_v14  ;;  %736 = vmatmul.mubr.msk.f32.vlgmr.msra.gmra.mrb[0].mxu0 %vm222_vm0, %v175_v15  ;;  %v189_v43 = vld [vmem:[%s885_s7 + $0x78] sm:$0xff] }
  0x1b   : > { %760 = vmatmul.mubr.msk.f32.vlgmr.msra.gmra.mrb[0].mxu1 %vm222_vm0, %v191_v16  ;;  %738 = vmatprep.mubr.msk.f32.mxu0 %vm222_vm0, %v176_v17  ;;  %v205_v44 = vld [vmem:[%s885_s7 + $0xf8] sm:$0xff] }
  0x1c   : > { %762 = vmatprep.mubr.msk.f32.mxu1 %vm222_vm0, %v192_v18 }
  0x1e   : > { %739 = vmatmul.mubr.msk.f32.gmra.mrb[2].mxu0 %vm222_vm0, %v177_v19 }
  0x1f   : > { %763 = vmatmul.mubr.msk.f32.gmra.mrb[2].mxu1 %vm222_vm0, %v193_v20  ;;  %741 = vmatprep.mubr.msk.f32.mxu0 %vm222_vm0, %v178_v21 }
  0x20   : > { %765 = vmatprep.mubr.msk.f32.mxu1 %vm222_vm0, %v194_v22 }
  0x22   : > { %742 = vmatmul.mubr.msk.f32.gmra.mrb[4].mxu0 %vm222_vm0, %v179_v23 }
  0x23   : > { %766 = vmatmul.mubr.msk.f32.gmra.mrb[4].mxu1 %vm222_vm0, %v195_v24  ;;  %744 = vmatprep.mubr.msk.f32.mxu0 %vm222_vm0, %v180_v25 }
  0x24   : > { %768 = vmatprep.mubr.msk.f32.mxu1 %vm222_vm0, %v196_v26 }
  0x26   : > { %745 = vmatmul.mubr.msk.f32.gmra.mrb[6].mxu0 %vm222_vm0, %v181_v27 }
  0x27   : > { %769 = vmatmul.mubr.msk.f32.gmra.mrb[6].mxu1 %vm222_vm0, %v197_v28  ;;  %747 = vmatprep.mubr.msk.f32.mxu0 %vm222_vm0, %v182_v29 }
  0x28   : > { %771 = vmatprep.mubr.msk.f32.mxu1 %vm222_vm0, %v198_v30 }
  0x2a   : > { %748 = vmatmul.mubr.msk.f32.gmra.mrb[8].mxu0 %vm222_vm0, %v183_v31 }
  0x2b   : > { %772 = vmatmul.mubr.msk.f32.gmra.mrb[8].mxu1 %vm222_vm0, %v199_v32  ;;  %750 = vmatprep.mubr.msk.f32.mxu0 %vm222_vm0, %v184_v33 }
  0x2c   : > { %774 = vmatprep.mubr.msk.f32.mxu1 %vm222_vm0, %v200_v34 }
  0x2e   : > { %751 = vmatmul.mubr.msk.f32.gmra.mrb[10].mxu0 %vm222_vm0, %v185_v35 }
  0x2f   : > { %775 = vmatmul.mubr.msk.f32.gmra.mrb[10].mxu1 %vm222_vm0, %v201_v36  ;;  %753 = vmatprep.mubr.msk.f32.mxu0 %vm222_vm0, %v186_v37 }
  0x30   : > { %777 = vmatprep.mubr.msk.f32.mxu1 %vm222_vm0, %v202_v38 }
  0x32   : > { %754 = vmatmul.mubr.msk.f32.gmra.mrb[12].mxu0 %vm222_vm0, %v187_v39 }
  0x33   : > { %778 = vmatmul.mubr.msk.f32.gmra.mrb[12].mxu1 %vm222_vm0, %v203_v40  ;;  %756 = vmatprep.mubr.msk.f32.mxu0 %vm222_vm0, %v188_v41 }
  0x34   : > { %780 = vmatprep.mubr.msk.f32.mxu1 %vm222_vm0, %v204_v42 }
  0x36   : > { %757 = vmatmul.mubr.msk.f32.gmra.mrb[14].mxu0 %vm222_vm0, %v189_v43 }
  0x37   : > { %781 = vmatmul.mubr.msk.f32.gmra.mrb[14].mxu1 %vm222_vm0, %v205_v44 }
  0xed   : > { %v737_v46 = vpop.f32.mrb[0].mxu0 }
  0xee   : > { %v761_v47 = vpop.f32.mrb[0].mxu1  ;;  %v391_v48 = vadd.f32 %v737_v46, %v957_v45  ;;  %v385_v50 = vpop.f32.mrb[1].mxu0 }
  0xef   : > { %v471_v49 = vadd.f32 %v761_v47, %v957_v45  ;;  %v465_v51 = vpop.f32.mrb[1].mxu1  ;;  %v386_v52 = vadd.f32 %v957_v45, %v385_v50 }
  0xf0   : > { %v466_v53 = vadd.f32 %v957_v45, %v465_v51  ;;  %545 = vst [vmem:[%s964_s15 + $0x8] sm:$0xff] %v391_v48 }
  0xf1   : > { %561 = vst [vmem:[%s964_s15 + $0x88] sm:$0xff] %v471_v49  ;;  %544 = vst [vmem:[%s964_s15] sm:$0xff] %v386_v52  ;;  %v740_v54 = vpop.f32.mrb[2].mxu0 }
  0xf2   : > { %560 = vst [vmem:[%s964_s15 + $0x80] sm:$0xff] %v466_v53  ;;  %v764_v55 = vpop.f32.mrb[2].mxu1  ;;  %v401_v56 = vadd.f32 %v740_v54, %v957_v45  ;;  %v395_v58 = vpop.f32.mrb[3].mxu0 }
  0xf3   : > { %v481_v57 = vadd.f32 %v764_v55, %v957_v45  ;;  %v475_v59 = vpop.f32.mrb[3].mxu1  ;;  %v396_v60 = vadd.f32 %v957_v45, %v395_v58 }
  0xf4   : > { %v476_v61 = vadd.f32 %v957_v45, %v475_v59  ;;  %547 = vst [vmem:[%s964_s15 + $0x18] sm:$0xff] %v401_v56 }
  0xf5   : > { %563 = vst [vmem:[%s964_s15 + $0x98] sm:$0xff] %v481_v57  ;;  %546 = vst [vmem:[%s964_s15 + $0x10] sm:$0xff] %v396_v60  ;;  %v743_v62 = vpop.f32.mrb[4].mxu0 }
  0xf6   : > { %562 = vst [vmem:[%s964_s15 + $0x90] sm:$0xff] %v476_v61  ;;  %v767_v63 = vpop.f32.mrb[4].mxu1  ;;  %v411_v0 = vadd.f32 %v743_v62, %v957_v45  ;;  %v405_v2 = vpop.f32.mrb[5].mxu0 }
  0xf7   : > { %v491_v1 = vadd.f32 %v767_v63, %v957_v45  ;;  %v485_v3 = vpop.f32.mrb[5].mxu1  ;;  %v406_v4 = vadd.f32 %v957_v45, %v405_v2 }
  0xf8   : > { %v486_v5 = vadd.f32 %v957_v45, %v485_v3  ;;  %549 = vst [vmem:[%s964_s15 + $0x28] sm:$0xff] %v411_v0 }
  0xf9   : > { %565 = vst [vmem:[%s964_s15 + $0xa8] sm:$0xff] %v491_v1  ;;  %548 = vst [vmem:[%s964_s15 + $0x20] sm:$0xff] %v406_v4  ;;  %v746_v6 = vpop.f32.mrb[6].mxu0 }
  0xfa   : > { %564 = vst [vmem:[%s964_s15 + $0xa0] sm:$0xff] %v486_v5  ;;  %v770_v7 = vpop.f32.mrb[6].mxu1  ;;  %v421_v8 = vadd.f32 %v746_v6, %v957_v45  ;;  %v415_v10 = vpop.f32.mrb[7].mxu0 }
  0xfb   : > { %v501_v9 = vadd.f32 %v770_v7, %v957_v45  ;;  %v495_v11 = vpop.f32.mrb[7].mxu1  ;;  %v416_v12 = vadd.f32 %v957_v45, %v415_v10 }
  0xfc   : > { %v496_v13 = vadd.f32 %v957_v45, %v495_v11  ;;  %551 = vst [vmem:[%s964_s15 + $0x38] sm:$0xff] %v421_v8 }
  0xfd   : > { %567 = vst [vmem:[%s964_s15 + $0xb8] sm:$0xff] %v501_v9  ;;  %550 = vst [vmem:[%s964_s15 + $0x30] sm:$0xff] %v416_v12  ;;  %v749_v14 = vpop.f32.mrb[8].mxu0 }
  0xfe   : > { %566 = vst [vmem:[%s964_s15 + $0xb0] sm:$0xff] %v496_v13  ;;  %v773_v15 = vpop.f32.mrb[8].mxu1  ;;  %v431_v16 = vadd.f32 %v749_v14, %v957_v45  ;;  %v425_v18 = vpop.f32.mrb[9].mxu0 }
  0xff   : > { %v511_v17 = vadd.f32 %v773_v15, %v957_v45  ;;  %v505_v19 = vpop.f32.mrb[9].mxu1  ;;  %v426_v20 = vadd.f32 %v957_v45, %v425_v18 }
 0x100   : > { %v506_v21 = vadd.f32 %v957_v45, %v505_v19  ;;  %553 = vst [vmem:[%s964_s15 + $0x48] sm:$0xff] %v431_v16 }
 0x101   : > { %569 = vst [vmem:[%s964_s15 + $0xc8] sm:$0xff] %v511_v17  ;;  %552 = vst [vmem:[%s964_s15 + $0x40] sm:$0xff] %v426_v20  ;;  %v752_v22 = vpop.f32.mrb[10].mxu0 }
 0x102   : > { %568 = vst [vmem:[%s964_s15 + $0xc0] sm:$0xff] %v506_v21  ;;  %v776_v23 = vpop.f32.mrb[10].mxu1  ;;  %v441_v24 = vadd.f32 %v752_v22, %v957_v45  ;;  %v435_v26 = vpop.f32.mrb[11].mxu0 }
 0x103   : > { %v521_v25 = vadd.f32 %v776_v23, %v957_v45  ;;  %v515_v27 = vpop.f32.mrb[11].mxu1  ;;  %v436_v28 = vadd.f32 %v957_v45, %v435_v26 }
 0x104   : > { %v516_v29 = vadd.f32 %v957_v45, %v515_v27  ;;  %555 = vst [vmem:[%s964_s15 + $0x58] sm:$0xff] %v441_v24 }
 0x105   : > { %571 = vst [vmem:[%s964_s15 + $0xd8] sm:$0xff] %v521_v25  ;;  %554 = vst [vmem:[%s964_s15 + $0x50] sm:$0xff] %v436_v28  ;;  %v755_v30 = vpop.f32.mrb[12].mxu0 }
 0x106   : > { %570 = vst [vmem:[%s964_s15 + $0xd0] sm:$0xff] %v516_v29  ;;  %v779_v31 = vpop.f32.mrb[12].mxu1  ;;  %v451_v32 = vadd.f32 %v755_v30, %v957_v45  ;;  %v445_v34 = vpop.f32.mrb[13].mxu0 }
 0x107   : > { %v531_v33 = vadd.f32 %v779_v31, %v957_v45  ;;  %v525_v35 = vpop.f32.mrb[13].mxu1  ;;  %v446_v36 = vadd.f32 %v957_v45, %v445_v34 }
 0x108   : > { %v526_v37 = vadd.f32 %v957_v45, %v525_v35  ;;  %557 = vst [vmem:[%s964_s15 + $0x68] sm:$0xff] %v451_v32 }
 0x109   : > { %573 = vst [vmem:[%s964_s15 + $0xe8] sm:$0xff] %v531_v33  ;;  %556 = vst [vmem:[%s964_s15 + $0x60] sm:$0xff] %v446_v36  ;;  %v758_v38 = vpop.f32.mrb[14].mxu0 }
 0x10a   : > { %572 = vst [vmem:[%s964_s15 + $0xe0] sm:$0xff] %v526_v37  ;;  %v782_v39 = vpop.f32.mrb[14].mxu1  ;;  %v461_v40 = vadd.f32 %v758_v38, %v957_v45  ;;  %v455_v42 = vpop.f32.mrb[15].mxu0 }
 0x10b   : > { %v541_v41 = vadd.f32 %v782_v39, %v957_v45  ;;  %v535_v43 = vpop.f32.mrb[15].mxu1  ;;  %v456_v44 = vadd.f32 %v957_v45, %v455_v42 }
 0x10c   : > { %v536_v46 = vadd.f32 %v957_v45, %v535_v43  ;;  %559 = vst [vmem:[%s964_s15 + $0x78] sm:$0xff] %v461_v40 }
 0x10d   : > { %575 = vst [vmem:[%s964_s15 + $0xf8] sm:$0xff] %v541_v41  ;;  %558 = vst [vmem:[%s964_s15 + $0x70] sm:$0xff] %v456_v44 }
 0x10e   : > { %574 = vst [vmem:[%s964_s15 + $0xf0] sm:$0xff] %v536_v46 }
 0x10f PF: > { %s13_s12 = sadd.s32 1, %s823_s12  }
 0x110   : > { %p10_p4 = scmp.ge.s32.totalorder %s13_s12, 4  }
 0x112   :  { %12 = sbr.rel (!%p10_p4) target bundleno = 1 (0x1), region = 62 }

</bundles_post_ra>
